<compile_context>
chip_gen: v6e
topology: v6e:2x2x1
jax: 0.10.0
libtpu: 0.0.40
codegen_flags: <defaults>
</compile_context>

<pallas_src>
import jax
import jax.numpy as jnp
from jax.experimental import pallas as pl
from jax.experimental.pallas import tpu as pltpu


def _round_up(x, m):
    return ((x + m - 1) // m) * m


def _combiner_kernel(agg_ref, old_ref, w_ref, b_ref, out_ref):
    # agg_ref/old_ref/out_ref: (br, Dp); w_ref: (Dp, Dp); b_ref: (1, Dp)
    y = jnp.dot(agg_ref[...], w_ref[...], preferred_element_type=jnp.float32)
    y = y + b_ref[...] + old_ref[...]
    out_ref[...] = jnp.maximum(y, 0.0).astype(out_ref.dtype)


def basic_combiner(old_state, agg_messages, weight_t, bias, *,
                   target_tile_bytes=1 << 20):
    """Pallas implementation of Basic_Combiner.forward.

    old_state, agg_messages: (..., D) float32, identical shapes.
    weight_t: (D, D) = PyTorch weight transposed (in_features, out_features).
    bias:     (D,) or (1, D).
    """
    assert old_state.shape == agg_messages.shape
    D = old_state.shape[-1]
    lead = old_state.shape[:-1]
    assert weight_t.shape == (D, D)
    bias2 = bias.reshape(1, D)

    # Flatten all leading dims into one big row axis (large row tiles, one
    # MXU matmul per grid step).
    old2 = old_state.reshape(-1, D)
    agg2 = agg_messages.reshape(-1, D)
    M = old2.shape[0]

    # ---- Lane-dense packing for small D (free, contiguous reshapes) -------
    pack = 1
    if D < 128 and 128 % D == 0 and M % (128 // D) == 0:
        pack = 128 // D
    Dp = D * pack            # feature dim seen by the kernel (128 when packed)
    rows = M // pack         # row count seen by the kernel

    if pack > 1:
        old2 = old2.reshape(rows, Dp)
        agg2 = agg2.reshape(rows, Dp)
        # Block-diagonal weight: pack copies of W_t on the diagonal.
        w_run = jnp.kron(jnp.eye(pack, dtype=weight_t.dtype), weight_t)
        b_run = jnp.tile(bias2, (1, pack))
    else:
        w_run = weight_t
        b_run = bias2

    # ---- Row block sized by bytes, sublane-aligned, grid >= 2 for v7x -----
    bytes_per_row = Dp * 4
    br = max(8, (target_tile_bytes // bytes_per_row) // 8 * 8)
    if rows >= 16:
        # Keep at least 2 grid steps so both v7x TensorCores get work.
        br = min(br, _round_up((rows + 1) // 2, 8))
    br = min(br, _round_up(rows, 8))
    br = max(br, 8)
    grid = (pl.cdiv(rows, br),)   # ragged tail -> partial block, masked store

    in_specs = [
        pl.BlockSpec((br, Dp), lambda i: (i, 0)),   # agg_messages (streamed)
        pl.BlockSpec((br, Dp), lambda i: (i, 0)),   # old_state    (streamed)
        pl.BlockSpec((Dp, Dp), lambda i: (0, 0)),   # weight       (resident)
        pl.BlockSpec((1, Dp),  lambda i: (0, 0)),   # bias         (resident)
    ]
    out_specs = pl.BlockSpec((br, Dp), lambda i: (i, 0))
    out_shape = jax.ShapeDtypeStruct((rows, Dp), old_state.dtype)

    # Double-buffered streamed tiles (agg, old, out) + resident weight/bias.
    vmem_bytes = (3 * 2 * br * Dp + 2 * Dp * Dp + 2 * Dp) * 4
    vmem_limit = int(min(max(2 * vmem_bytes, 16 << 20), 48 << 20))

    cost = pl.CostEstimate(
        flops=2 * rows * Dp * Dp + 2 * rows * Dp,
        transcendentals=0,
        bytes_accessed=(3 * rows * Dp + Dp * Dp + Dp) * 4,
    )

    f = pl.pallas_call(
        _combiner_kernel,
        grid_spec=pltpu.PrefetchScalarGridSpec(
            num_scalar_prefetch=0,
            grid=grid,
            in_specs=in_specs,
            out_specs=out_specs,
        ),
        out_shape=out_shape,
        cost_estimate=cost,
        compiler_params=pltpu.CompilerParams(
            dimension_semantics=("parallel",),
            vmem_limit_bytes=vmem_limit,
        ),
    )
    out = f(agg2, old2, w_run, b_run)
    # Packed layout unpacks for free: total element count is exactly M*D.
    return out.reshape(*lead, D)


def ref_basic_combiner(old_state, agg_messages, weight_t, bias):
    """Pure-JAX reference mirroring the PyTorch forward exactly."""
    return jax.nn.relu(agg_messages @ weight_t + bias.reshape(-1) + old_state)


def init_params(key, D):
    kw, kb = jax.random.split(key)
    s = 1.0 / jnp.sqrt(jnp.float32(D))
    # weight stored as (in_features, out_features) == PyTorch W.T
    w_t = jax.random.uniform(kw, (D, D), jnp.float32, -s, s)
    b = jax.random.uniform(kb, (D,), jnp.float32, -s, s)
    return w_t, b


if __name__ == "__main__":
    # batch=2 graphs x 128 nodes, state_dim=32 -> 256 rows.
    # With D=32 the wrapper packs 4 rows per 128-lane row (64 packed rows),
    # and the grid splits them into 2 blocks -> both v7x TCs busy.
    B, N, D = 2, 128, 32
    key = jax.random.PRNGKey(0)
    k_old, k_agg, k_p = jax.random.split(key, 3)

    old_state = jax.random.normal(k_old, (B, N, D), jnp.float32)
    agg_messages = jax.random.normal(k_agg, (B, N, D), jnp.float32)
    w_t, b = init_params(k_p, D)

    out = basic_combiner(old_state, agg_messages, w_t, b)
    jax.block_until_ready(out)

    ref = ref_basic_combiner(old_state, agg_messages, w_t, b)
    assert out.shape == ref.shape
    assert jnp.allclose(out, ref, atol=1e-5, rtol=1e-5)

    print("KERNEL_OK")
</pallas_src>

<mosaic_0001>
module attributes {stable_mosaic.version = 11 : i64} {
  func.func @_combiner_kernel(%arg0: i32, %arg1: memref<32x128xf32, #tpu.memory_space<vmem>>, %arg2: memref<32x128xf32, #tpu.memory_space<vmem>>, %arg3: memref<128x128xf32, #tpu.memory_space<vmem>>, %arg4: memref<1x128xf32, #tpu.memory_space<vmem>>, %arg5: memref<32x128xf32, #tpu.memory_space<vmem>>) attributes {dimension_semantics = [#tpu.dimension_semantics<parallel>], iteration_bounds = array<i64: 2>, scalar_prefetch = 0 : i64, scratch_operands = 0 : i64, tpu.core_type = #tpu.core_type<tc>, window_params = [{transform_indices = @transform_0, window_bounds = array<i64: 32, 128>}, {transform_indices = @transform_1, window_bounds = array<i64: 32, 128>}, {pipeline_mode = #tpu.pipeline_mode<synchronous>, transform_indices = @transform_2, window_bounds = array<i64: 128, 128>}, {pipeline_mode = #tpu.pipeline_mode<synchronous>, transform_indices = @transform_3, window_bounds = array<i64: 1, 128>}, {transform_indices = @transform_4, window_bounds = array<i64: 32, 128>}]} {
    %c0 = arith.constant 0 : index
    %c0_0 = arith.constant 0 : index
    %0 = vector.load %arg1[%c0, %c0_0] : memref<32x128xf32, #tpu.memory_space<vmem>>, vector<32x128xf32>
    %c0_1 = arith.constant 0 : index
    %c0_2 = arith.constant 0 : index
    %1 = vector.load %arg3[%c0_1, %c0_2] : memref<128x128xf32, #tpu.memory_space<vmem>>, vector<128x128xf32>
    %cst = arith.constant dense<0.000000e+00> : vector<32x128xf32>
    %2 = tpu.matmul %0, %1, %cst {dimension_numbers = #tpu.dot_dimension_numbers<[1], [0], [0], [1], [0, 0, 1, 1], [], []>} : vector<32x128xf32>, vector<128x128xf32>, vector<32x128xf32> -> vector<32x128xf32>
    %c0_3 = arith.constant 0 : index
    %c0_4 = arith.constant 0 : index
    %3 = vector.load %arg4[%c0_3, %c0_4] : memref<1x128xf32, #tpu.memory_space<vmem>>, vector<1x128xf32>
    %4 = vector.broadcast %3 : vector<1x128xf32> to vector<32x128xf32>
    %5 = arith.addf %2, %4 : vector<32x128xf32>
    %c0_5 = arith.constant 0 : index
    %c0_6 = arith.constant 0 : index
    %6 = vector.load %arg2[%c0_5, %c0_6] : memref<32x128xf32, #tpu.memory_space<vmem>>, vector<32x128xf32>
    %7 = arith.addf %5, %6 : vector<32x128xf32>
    %cst_7 = arith.constant 0.000000e+00 : f32
    %8 = vector.broadcast %cst_7 : f32 to vector<32x128xf32>
    %9 = arith.maximumf %7, %8 : vector<32x128xf32>
    %c0_8 = arith.constant 0 : index
    %c0_9 = arith.constant 0 : index
    %10 = vector.load %arg5[%c0_8, %c0_9] : memref<32x128xf32, #tpu.memory_space<vmem>>, vector<32x128xf32>
    tpu.vector_store %arg5[%c0_8, %c0_9], %9 {strides = array<i32>} : memref<32x128xf32, #tpu.memory_space<vmem>>, vector<32x128xf32>,
    return
  }
  func.func @transform_0(%arg0: i32) -> (i32, i32) {
    %c0_i32 = arith.constant 0 : i32
    %c0_i32_0 = arith.constant 0 : i32
    return %arg0, %c0_i32 : i32, i32
  }
  func.func @transform_1(%arg0: i32) -> (i32, i32) {
    %c0_i32 = arith.constant 0 : i32
    %c0_i32_0 = arith.constant 0 : i32
    return %arg0, %c0_i32 : i32, i32
  }
  func.func @transform_2(%arg0: i32) -> (i32, i32) {
    %c0_i32 = arith.constant 0 : i32
    %c0_i32_0 = arith.constant 0 : i32
    %c0_i32_1 = arith.constant 0 : i32
    return %c0_i32, %c0_i32_0 : i32, i32
  }
  func.func @transform_3(%arg0: i32) -> (i32, i32) {
    %c0_i32 = arith.constant 0 : i32
    %c0_i32_0 = arith.constant 0 : i32
    %c0_i32_1 = arith.constant 0 : i32
    return %c0_i32, %c0_i32_0 : i32, i32
  }
  func.func @transform_4(%arg0: i32) -> (i32, i32) {
    %c0_i32 = arith.constant 0 : i32
    %c0_i32_0 = arith.constant 0 : i32
    return %arg0, %c0_i32 : i32, i32
  }
}

</mosaic_0001>

<bundles_post_ra>
// kernel: tpu_custom_call.1
= control target key start
LH: loop header
LB: loop body
LE: loop exit
PB: predicated region body
PF: predicated region fallthrough
CT: control target
= control target key end

     0   :  { %s1140_s0 = inlined_call_operand.hbm [shape: f32[64,128], index: 0, kind: input, shape index: {}]   ;;  %s1141_s1 = inlined_call_operand.hbm [shape: f32[64,128], index: 1, kind: input, shape index: {}]   ;;  %s1142_s2 = inlined_call_operand.hbm [shape: f32[128,128], index: 2, kind: input, shape index: {}]   ;;  %s1143_s3 = inlined_call_operand.vmem [shape: f32[1,128], index: 3, kind: input, shape index: {}]   ;;  %s1144_s4 = inlined_call_operand.hbm [shape: f32[64,128], index: 4, kind: output, shape index: {}]  }
   0x1   :  { %1152 = sst [smem:[#allocation14_spill]] %s1140_s0 }
   0x2   :  { %1153 = sst [smem:[#allocation15_spill]] %s1142_s2 }
   0x3   :  { %9 = vsyncpa [#allocation3], 0 }
   0x4   :  { %11 = vsyncpa [#allocation3 + $0x1], 0 }
   0x5   :  { %12 = vsyncpa [#allocation6], 0 }
   0x6   :  { %14 = vsyncpa [#allocation6 + $0x1], 0 }
   0x7   :  { %15 = vsyncpa [#allocation4], 0 }
   0x8   :  { %17 = vsyncpa [#allocation4 + $0x1], 0  ;;  %s889_s15 = smov 0   ;;  %s891_s16 = smov 0  }
   0x9   :  { %s893_s17 = smov 0   ;;  %s895_s18 = smov 0  }
   0xa LB: > { %s910_s19 = sadd.s32 4294967295, %s854_s18   ;;  %s520_s20 = sadd.s32 4294967294, %s854_s18   ;;  %s854_s18 = sphi %s895_s18, %s1176_s18   ;;  %s850_s17 = sphi %s893_s17, %s1175_s17   ;;  %s846_s16 = sphi %s891_s16, %s1174_s16   ;;  %s842_s15 = sphi %s889_s15, %s1173_s15  }
   0xb   : > { %p43_p0 = scmp.ne.s32.totalorder %s846_s16, %s842_s15  ;;  %p1149_p1 = scmp.eq.s32.totalorder %s910_s19, 0 }
   0xc   : > { %p141_p3 = scmp.eq.s32.totalorder %s520_s20, 1  ;;  %p521_p5 = scmp.ge.s32.totalorder %s854_s18, 1 }
   0xd   : > { %p919_p4 = por %p1149_p1, %p43_p0  ;;  %p148_p7 = scmp.lt.s32.totalorder %s854_s18, 3 }
   0xe   : > { %p924_p6 = por %p141_p3, %p43_p0  ;;  %s856_s24 = smov [#allocation7]  }
   0xf   : > { %s1154_s21 = scalar_select %p919_p4, 1, 0 }
  0x10   : > { %s1155_s22 = scalar_select %p924_p6, 1, 0 }
  0x11   : > { %p929_p8 = pnand %p521_p5, %p148_p7  ;;  %s160_s25 = sshll.u32 %s856_s24, 4  ;;  %s161_s25 = int_to_ptr.vmem [resolvable:$true] %s160_s25 }
  0x12   : > { %s943_s27 = sadd.s32 1, %s854_s18   ;;  %s30_s28 = sadd.s32 1, %s850_s17 }
  0x13   : > { %p644_p9 = pneg %p929_p8  ;;  %s27_s29 = ssub.s32 %s854_s18, %s943_s27 }
  0x14   : > { %s711_s30 = scalar_lea.vmem %s161_s25, 2048  ;;  %p719_p5 = scmp.lt.s32.totalorder %s161_s25, %s161_s25 }
  0x15   : > { %p938_p11 = pnand %p644_p9, %p1149_p1  ;;  %p712_p13 = scmp.ne.s32.totalorder %s161_s25, %s711_s30 }
  0x16   : > { %p720_p7 = scmp.lt.s32.totalorder %s711_s30, %s711_s30 }
  0x17   : > { %p702_p12 = pneg %p938_p11 }
  0x18   : > { %p721_p10 = por %p720_p7, %p719_p5 }
  0x19   : > { %p714_p0 = pnand %p712_p13, %p702_p12 }
  0x1b   : > { %p715_p3 = pneg %p714_p0 }
  0x1d   : > { %p722_p2 = pnand %p721_p10, %p715_p3 }
  0x1f   : > { %725 = shalt.err (!%p722_p2)
}
  0x20   : > { %s1145_s5 = smov 128   ;;  %s1147_s6 = smov 8  }
  0x21   : > { %s1158_s2 = sld [smem:[#allocation15_spill]]  ;;  %p28_p2 = scmp.eq.s32.totalorder %s27_s29, 0 }
  0x22   : > { %p37_p9 = scmp.ne.s32.totalorder %s850_s17, %s846_s16  ;;  %p38_p10 = scmp.eq.s32.totalorder %s854_s18, 0 }
  0x23   : > { %p660_p12 = scmp.lt.s32.totalorder %s854_s18, 2  ;;  %p1160_p0 = scmp.eq.s32.totalorder %s910_s19, 1 }
  0x24   : > { %s963_s9 = scalar_select %p28_p2, %s850_s17, %s30_s28  }
  0x25   : > { %p39_p13 = por %p38_p10, %p37_p9  ;;  %p967_p3 = por %p1160_p0, %p37_p9 }
  0x26   : > { %1159 = sst [smem:[#allocation13_spill]] %s963_s9  ;;  %s177_s11 = sand.u32 1, %s850_s17  }
  0x27   : > { %647 = dma.hbm_to_vmem [thread:$0]  (!%p938_p11), %s1158_s2, 2048, %s161_s25, [#allocation6], %s1145_s5, %s1145_s5, %s1147_s6  }
  0x28   : > { %s1161_s10 = scalar_select %p967_p3, 1, 0 }
  0x29   : > { %s541_s12 = sshll.u32 %s854_s18, 9  ;;  %s973_s13 = sshll.u32 %s177_s11, 5 }
  0x2a   : > { %s1162_s0 = sld [smem:[#allocation14_spill]]  ;;  %s181_s25 = scalar_lea.vmem [#allocation2], %s973_s13 }
  0x2b   : > { %s188_s26 = sshll.u32 %s181_s25, 4  ;;  %p981_p11 = pnand %p660_p12, %p39_p13  ;;  %s985_s26 = int_to_ptr.vmem [resolvable:$true] %s188_s26 }
  0x2c   : > { %s990_s7 = scalar_lea.hbm %s1141_s1, %s541_s12  ;;  %s992_s8 = scalar_lea.sflag [#allocation3], %s177_s11 }
  0x2d   : > { %p728_p7 = pneg %p981_p11 }
  0x30   : > { %s978_s24 = scalar_lea.hbm %s1162_s0, %s541_s12  ;;  %s731_s5 = scalar_lea.hbm %s1162_s0, 1024 }
  0x31   : > { %s726_s14 = scalar_lea.hbm %s978_s24, 512  ;;  %p732_p10 = scmp.lt.s32.totalorder %s978_s24, %s1162_s0 }
  0x32   : > { %p727_p5 = scmp.ne.s32.totalorder %s978_s24, %s726_s14  ;;  %p733_p12 = scmp.lt.s32.totalorder %s731_s5, %s726_s14 }
  0x34   : > { %p729_p2 = pnand %p728_p7, %p727_p5  ;;  %p734_p13 = por %p733_p12, %p732_p10 }
  0x36   : > { %p730_p9 = pneg %p729_p2 }
  0x38   : > { %p735_p0 = pnand %p734_p13, %p730_p9 }
  0x3a   : > { %738 = shalt.err (!%p735_p0)
}
  0x3b   : > { %s739_s11 = scalar_lea.vmem %s985_s26, 512  ;;  %s859_s12 = smov [#allocation2]  }
  0x3c   : > { %p740_p1 = scmp.ne.s32.totalorder %s985_s26, %s739_s11  ;;  %s744_s29 = sshll.u32 %s859_s12, 4  ;;  %s745_s29 = int_to_ptr.vmem [resolvable:$false] %s744_s29 }
  0x3d   : > { %s746_s30 = scalar_lea.vmem %s745_s29, 1024  ;;  %p747_p6 = scmp.lt.s32.totalorder %s985_s26, %s745_s29 }
  0x3e   : > { %p742_p5 = pnand %p740_p1, %p728_p7  ;;  %p748_p3 = scmp.lt.s32.totalorder %s746_s30, %s739_s11 }
  0x40   : > { %p743_p2 = pneg %p742_p5  ;;  %p749_p4 = por %p748_p3, %p747_p6 }
  0x42   : > { %p750_p10 = pnand %p749_p4, %p743_p2 }
  0x44   : > { %753 = shalt.err (!%p750_p10)
}
  0x45   : > { %s1164_s2 = smov 8   ;;  %s1165_s5 = smov 128  }
  0x46   : > { %651 = dma.hbm_to_vmem [thread:$0]  (!%p981_p11), %s978_s24, 512, %s985_s26, %s992_s8, %s1165_s5, %s1165_s5, %s1164_s2  }
  0x47   : > { %s202_s6 = scalar_lea.vmem [#allocation5], %s973_s13  ;;  %s198_s20 = sand.u32 1, %s854_s18  }
  0x48   : > { %s209_s14 = sshll.u32 %s202_s6, 4  ;;  %s199_s25 = scalar_lea.sflag [#allocation6], %s198_s20  ;;  %s1024_s14 = int_to_ptr.vmem [resolvable:$true] %s209_s14 }
  0x49   : > { %s754_s11 = scalar_lea.hbm %s990_s7, 512  ;;  %s759_s30 = scalar_lea.hbm %s1141_s1, 1024 }
  0x4a   : > { %p755_p1 = scmp.ne.s32.totalorder %s990_s7, %s754_s11  ;;  %p760_p3 = scmp.lt.s32.totalorder %s990_s7, %s1141_s1 }
  0x4b   : > { %p761_p9 = scmp.lt.s32.totalorder %s759_s30, %s754_s11 }
  0x4c   : > { %p757_p4 = pnand %p755_p1, %p728_p7 }
  0x4d   : > { %p762_p12 = por %p761_p9, %p760_p3 }
  0x4e   : > { %p758_p6 = pneg %p757_p4 }
  0x50   : > { %p763_p13 = pnand %p762_p12, %p758_p6 }
  0x52   : > { %766 = shalt.err (!%p763_p13)
}
  0x53   : > { %s767_s13 = scalar_lea.vmem %s1024_s14, 512  ;;  %s860_s24 = smov [#allocation5]  }
  0x54   : > { %p768_p0 = scmp.ne.s32.totalorder %s1024_s14, %s767_s13  ;;  %s772_s26 = sshll.u32 %s860_s24, 4  ;;  %s773_s26 = int_to_ptr.vmem [resolvable:$false] %s772_s26 }
  0x55   : > { %s774_s8 = scalar_lea.vmem %s773_s26, 1024  ;;  %p775_p10 = scmp.lt.s32.totalorder %s1024_s14, %s773_s26 }
  0x56   : > { %p770_p5 = pnand %p768_p0, %p728_p7  ;;  %p776_p1 = scmp.lt.s32.totalorder %s774_s8, %s767_s13 }
  0x58   : > { %p771_p2 = pneg %p770_p5  ;;  %p777_p4 = por %p776_p1, %p775_p10 }
  0x5a   : > { %p778_p3 = pnand %p777_p4, %p771_p2 }
  0x5c   : > { %781 = shalt.err (!%p778_p3)
}
  0x5d   : > { %654 = dma.hbm_to_vmem [thread:$0]  (!%p981_p11), %s990_s7, 512, %s1024_s14, %s199_s25, %s1165_s5, %s1165_s5, %s1164_s2  }
  0x5e   : > { %221 = sbr.rel (%p929_p8) target bundleno = 355 (0x163), region = 36  ;;  %s1054_s0 = sand.u32 (!%p929_p8), 1, %s846_s16  }
  0x5f   : > { %s1057_s9 = sshll.u32 (!%p929_p8), %s1054_s0, 5  ;;  %s224_s6 = scalar_lea.sflag (!%p929_p8), [#allocation3], %s1054_s0 }
  0x60   : > { %s1061_s28 = scalar_lea.vmem (!%p929_p8), [#allocation2], %s1057_s9  ;;  %p1166_p7 = scmp.ne.s32.totalorder (!%p929_p8), %s1154_s21, 0 }
  0x63   : > { %825 = dma.done.wait (%p1166_p7), %s224_s6, 512  }
  0x64   : > { %827 = vsyncadd (%p1166_p7), %s224_s6, 4294966784  ;;  %s232_s23 = sand.u32 1, %s910_s19   ;;  %s1069_s2 = scalar_lea.vmem [#allocation5], %s1057_s9 }
  0x65   : > { %s233_s7 = scalar_lea.sflag [#allocation6], %s232_s23 }
  0x66   : > { %829 = dma.done.wait (%p1166_p7), %s233_s7, 512  }
  0x67   : > { %831 = vsyncadd (%p1166_p7), %s233_s7, 4294966784  ;;  %p1167_p8 = scmp.eq.s32.totalorder %s910_s19, 0 }
  0x69   : > { %833 = dma.done.wait (%p1167_p8), [#allocation6], 2048   ;;  %p1168_p11 = pmov %p1167_p8 }
  0x6a   : > { %v292_v0 = vld [vmem:[#allocation7 + $0x78] sm:$0xff]  ;;  %v291_v1 = vld [vmem:[#allocation7 + $0x70] sm:$0xff]  ;;  %v290_v2 = vld [vmem:[#allocation7 + $0x68] sm:$0xff]  ;;  %s269_s14 = scalar_lea.vmem [#allocation8], %s1057_s9  ;;  %s543_s25 = sshll.u32 %s910_s19, 9 }
  0x6b   : > { %835 = vsyncadd (%p1168_p11), [#allocation6], 4294965248  ;;  %564 = vmatprep.subr.mxu0 %v292_v0  ;;  %602 = vmatprep.subr.mxu1 %v292_v0  ;;  %v289_v3 = vld [vmem:[#allocation7 + $0x60] sm:$0xff]  ;;  %v288_v4 = vld [vmem:[#allocation7 + $0x58] sm:$0xff]  ;;  %s415_s20 = sshll.u32 %s269_s14, 4  ;;  %s1097_s29 = scalar_lea.hbm %s1144_s4, %s543_s25  ;;  %s1092_s20 = int_to_ptr.vmem [resolvable:$true] %s415_s20 }
  0x6c   : > { %565 = vmatpush3.msra.mxu0 %v292_v0  ;;  %618 = vmatpush3.msra.mxu1 %v292_v0  ;;  %v287_v5 = vld [vmem:[#allocation7 + $0x50] sm:$0xff]  ;;  %v286_v6 = vld [vmem:[#allocation7 + $0x48] sm:$0xff]  ;;  %v285_v7 = vld [vmem:[#allocation7 + $0x40] sm:$0xff]  ;;  %s402_s19 = scalar_lea.sflag [#allocation4], %s1054_s0  ;;  %s782_s30 = scalar_lea.vmem %s1092_s20, 512 }
  0x6d   : > { %566 = vmatprep.subr.mxu0 %v291_v1  ;;  %603 = vmatprep.subr.mxu1 %v291_v1  ;;  %v284_v8 = vld [vmem:[#allocation7 + $0x38] sm:$0xff]  ;;  %v283_v9 = vld [vmem:[#allocation7 + $0x30] sm:$0xff]  ;;  %v282_v10 = vld [vmem:[#allocation7 + $0x28] sm:$0xff]  ;;  %p783_p6 = scmp.ne.s32.totalorder %s1092_s20, %s782_s30  ;;  %p1169_p9 = scmp.ne.s32.totalorder %s1161_s10, 0 }
  0x6e   : > { %567 = vmatpush3.msra.mxu0 %v291_v1  ;;  %619 = vmatpush3.msra.mxu1 %v291_v1  ;;  %v281_v11 = vld [vmem:[#allocation7 + $0x20] sm:$0xff]  ;;  %v280_v12 = vld [vmem:[#allocation7 + $0x18] sm:$0xff]  ;;  %v279_v13 = vld [vmem:[#allocation7 + $0x10] sm:$0xff]  ;;  %s861_s13 = smov [#allocation8]  }
  0x6f   : > { %568 = vmatprep.subr.mxu0 %v290_v2  ;;  %604 = vmatprep.subr.mxu1 %v290_v2  ;;  %v278_v14 = vld [vmem:[#allocation7 + $0x8] sm:$0xff]  ;;  %v277_v15 = vld [vmem:[#allocation7] sm:$0xff]  ;;  %v275_v17 = vld [vmem:[%s1061_s28 + $0x10] sm:$0xff]  ;;  %p784_p12 = pnand %p783_p6, %p1169_p9  ;;  %s786_s24 = sshll.u32 %s861_s13, 4  ;;  %s787_s24 = int_to_ptr.vmem [resolvable:$false] %s786_s24 }
  0x70   : > { %569 = vmatpush3.msra.mxu0 %v290_v2  ;;  %620 = vmatpush3.msra.mxu1 %v290_v2  ;;  %v273_v16 = vld [vmem:[%s1061_s28] sm:$0xff]  ;;  %v274_v18 = vld [vmem:[%s1061_s28 + $0x8] sm:$0xff]  ;;  %v276_v19 = vld [vmem:[%s1061_s28 + $0x18] sm:$0xff]  ;;  %s788_s26 = scalar_lea.vmem %s787_s24, 1024  ;;  %p789_p0 = scmp.lt.s32.totalorder %s1092_s20, %s787_s24 }
  0x71   : > { %570 = vmatprep.subr.mxu0 %v289_v3  ;;  %605 = vmatprep.subr.mxu1 %v289_v3  ;;  %v535_v20 = vld [vmem:[%s1143_s3] ss:$0 sm:$0xff]  ;;  %v386_v22 = vld [vmem:[%s1069_s2 + $0x8] sm:$0xff]  ;;  %v388_v24 = vld [vmem:[%s1069_s2 + $0x18] sm:$0xff]  ;;  %p785_p13 = pneg %p784_p12  ;;  %p790_p5 = scmp.lt.s32.totalorder %s788_s26, %s782_s30 }
  0x72   : > { %571 = vmatpush3.msra.mxu0 %v289_v3  ;;  %621 = vmatpush3.msra.mxu1 %v289_v3  ;;  %v385_v28 = vld [vmem:[%s1069_s2] sm:$0xff]  ;;  %v387_v30 = vld [vmem:[%s1069_s2 + $0x10] sm:$0xff] }
  0x73   : > { %572 = vmatprep.subr.mxu0 %v288_v4  ;;  %606 = vmatprep.subr.mxu1 %v288_v4  ;;  %p791_p2 = por %p790_p5, %p789_p0 }
  0x74   : > { %573 = vmatpush3.msra.mxu0 %v288_v4  ;;  %622 = vmatpush3.msra.mxu1 %v288_v4 }
  0x75   : > { %574 = vmatprep.subr.mxu0 %v287_v5  ;;  %607 = vmatprep.subr.mxu1 %v287_v5  ;;  %p792_p10 = pnand %p791_p2, %p785_p13 }
  0x76   : > { %575 = vmatpush3.msra.mxu0 %v287_v5  ;;  %623 = vmatpush3.msra.mxu1 %v287_v5 }
  0x77   : > { %576 = vmatprep.subr.mxu0 %v286_v6  ;;  %608 = vmatprep.subr.mxu1 %v286_v6 }
  0x78   : > { %577 = vmatpush3.msra.mxu0 %v286_v6  ;;  %624 = vmatpush3.msra.mxu1 %v286_v6 }
  0x79   : > { %578 = vmatprep.subr.mxu0 %v285_v7  ;;  %609 = vmatprep.subr.mxu1 %v285_v7 }
  0x7a   : > { %579 = vmatpush3.msra.mxu0 %v285_v7  ;;  %625 = vmatpush3.msra.mxu1 %v285_v7 }
  0x7b   : > { %580 = vmatprep.subr.mxu0 %v284_v8  ;;  %610 = vmatprep.subr.mxu1 %v284_v8 }
  0x7c   : > { %581 = vmatpush3.msra.mxu0 %v284_v8  ;;  %626 = vmatpush3.msra.mxu1 %v284_v8 }
  0x7d   : > { %582 = vmatprep.subr.mxu0 %v283_v9  ;;  %611 = vmatprep.subr.mxu1 %v283_v9 }
  0x7e   : > { %583 = vmatpush3.msra.mxu0 %v283_v9  ;;  %627 = vmatpush3.msra.mxu1 %v283_v9 }
  0x7f   : > { %584 = vmatprep.subr.mxu0 %v282_v10  ;;  %612 = vmatprep.subr.mxu1 %v282_v10 }
  0x80   : > { %585 = vmatpush3.msra.mxu0 %v282_v10  ;;  %628 = vmatpush3.msra.mxu1 %v282_v10 }
  0x81   : > { %586 = vmatprep.subr.mxu0 %v281_v11  ;;  %613 = vmatprep.subr.mxu1 %v281_v11 }
  0x82   : > { %587 = vmatpush3.msra.mxu0 %v281_v11  ;;  %629 = vmatpush3.msra.mxu1 %v281_v11 }
  0x83   : > { %588 = vmatprep.subr.mxu0 %v280_v12  ;;  %614 = vmatprep.subr.mxu1 %v280_v12 }
  0x84   : > { %589 = vmatpush3.msra.mxu0 %v280_v12  ;;  %630 = vmatpush3.msra.mxu1 %v280_v12 }
  0x85   : > { %590 = vmatprep.subr.mxu0 %v279_v13  ;;  %615 = vmatprep.subr.mxu1 %v279_v13 }
  0x86   : > { %591 = vmatpush3.msra.mxu0 %v279_v13  ;;  %631 = vmatpush3.msra.mxu1 %v279_v13 }
  0x87   : > { %592 = vmatprep.subr.mxu0 %v278_v14  ;;  %616 = vmatprep.subr.mxu1 %v278_v14 }
  0x88   : > { %593 = vmatpush3.msra.mxu0 %v278_v14  ;;  %632 = vmatpush3.msra.mxu1 %v278_v14 }
  0x89   : > { %594 = vmatprep.subr.mxu0 %v277_v15  ;;  %617 = vmatprep.subr.mxu1 %v277_v15 }
  0x8a   : > { %595 = vmatpush3.msra.mxu0 %v277_v15  ;;  %633 = vmatpush3.msra.mxu1 %v277_v15 }
  0x8b   : > { %596 = vmatprep.mubr.f32.mxu0 %v273_v16  ;;  %599 = vmatprep.mubr.f32.mxu1 %v275_v17 }
  0x8c   : > { %597 = vmatmul.mubr.f32.vlgmr.msra.gmra.mxu0 %v274_v18  ;;  %600 = vmatmul.mubr.f32.vlgmr.msra.gmra.mxu1 %v276_v19 }
 0x14c   : > { %v598_v21 = vpop.f32.mrf.mxu0  ;;  %v601_v23 = vpop.f32.mrf.mxu1 }
 0x14d   : > { %v372_v25 = vadd.f32 %v598_v21, %v535_v20  ;;  %v382_v26 = vadd.f32 %v601_v23, %v535_v20 }
 0x14e   : > { %v366_v27 = vpop.f32.mrf.mxu0  ;;  %v376_v29 = vpop.f32.mrf.mxu1 }
 0x14f   : > { %v390_v31 = vadd.f32 %v386_v22, %v372_v25  ;;  %v392_v32 = vadd.f32 %v388_v24, %v382_v26  ;;  %v367_v33 = vadd.f32 %v535_v20, %v366_v27  ;;  %v377_v34 = vadd.f32 %v535_v20, %v376_v29 }
 0x151   : > { %v394_v35 = vmax.f32 %v390_v31, 0.0  ;;  %v396_v36 = vmax.f32 %v392_v32, 0.0  ;;  %v389_v37 = vadd.f32 %v385_v28, %v367_v33  ;;  %v391_v38 = vadd.f32 %v387_v30, %v377_v34 }
 0x153   : > { %398 = vst [vmem:[%s269_s14 + $0x8] sm:$0xff] %v394_v35  ;;  %400 = vst [vmem:[%s269_s14 + $0x18] sm:$0xff] %v396_v36  ;;  %v393_v39 = vmax.f32 %v389_v37, 0.0  ;;  %v395_v40 = vmax.f32 %v391_v38, 0.0 }
 0x155   : > { %397 = vst [vmem:[%s269_s14] sm:$0xff] %v393_v39  ;;  %399 = vst [vmem:[%s269_s14 + $0x10] sm:$0xff] %v395_v40 }
 0x156   : > { %795 = shalt.err (!%p792_p10)
}
 0x157   : > { %s796_s8 = scalar_lea.hbm %s1097_s29, 512  ;;  %s800_s28 = scalar_lea.hbm %s1144_s4, 1024 }
 0x158   : > { %p797_p1 = scmp.ne.s32.totalorder %s1097_s29, %s796_s8  ;;  %p801_p7 = scmp.lt.s32.totalorder %s1097_s29, %s1144_s4 }
 0x159   : > { %p802_p8 = scmp.lt.s32.totalorder %s800_s28, %s796_s8 }
 0x15a   : > { %p798_p4 = pnand %p797_p1, %p1169_p9 }
 0x15b   : > { %p803_p11 = por %p802_p8, %p801_p7 }
 0x15c   : > { %p799_p3 = pneg %p798_p4 }
 0x15e   : > { %p804_p6 = pnand %p803_p11, %p799_p3 }
 0x160   : > { %807 = shalt.err (!%p804_p6)
}
 0x161   : > { %s862_s2 = smov 128   ;;  %s863_s21 = smov 8  }
 0x162   : > { %642 = dma.vmem_to_hbm [thread:$0]  (%p1169_p9), %s1092_s20, 512, %s1097_s29, %s402_s19, %s862_s2, %s862_s2, %s863_s21  }
 0x163 PF: > { %s430_s5 = sand.u32 1, %s842_s15   ;;  %p1170_p12 = scmp.ne.s32.totalorder %s1155_s22, 0 }
 0x164   : > { %p1171_p13 = scmp.ge.s32.totalorder %s854_s18, 2  ;;  %s431_s14 = scalar_lea.sflag [#allocation4], %s430_s5 }
 0x166   : > { %p656_p0 = pnand %p1171_p13, %p1170_p12 }
 0x168   : > { %p657_p5 = pneg %p656_p0 }
 0x16a   : > { %837 = dma.done.wait (%p657_p5), %s431_s14, 512  }
 0x16b   : > { %839 = vsyncadd (%p657_p5), %s431_s14, 4294966784  ;;  %s1172_s25 = sld [smem:[#allocation13_spill]]  ;;  %p20_p2 = scmp.ge.s32.totalorder %s943_s27, 4  }
 0x16c   : > { %s1173_s15 = smov %s846_s16  ;;  %s1174_s16 = smov %s850_s17 }
 0x16d   : > { %s1176_s18 = smov %s943_s27  ;;  %22 = sbr.rel (!%p20_p2) target bundleno = 10 (0xa), region = 98 }
 0x171   : > { %s1175_s17 = smov %s1172_s25 }
 0x172   :  { %436 = vsyncpa [#allocation3], 1 }
 0x173   :  { %438 = vsyncpa [#allocation3 + $0x1], 1 }
 0x174   :  { %439 = vsyncpa [#allocation6], 1 }
 0x175   :  { %441 = vsyncpa [#allocation6 + $0x1], 1 }
 0x176   :  { %442 = vsyncpa [#allocation4], 1 }
 0x177   :  { %444 = vsyncpa [#allocation4 + $0x1], 1 }

</bundles_post_ra>
